<compile_context>
chip_gen: v7x
topology: tpu7x:2x2x1
jax: 0.10.0
libtpu: 0.0.40
codegen_flags: <defaults>
</compile_context>

<pallas_src>
import jax
import jax.numpy as jnp
from jax.experimental import pallas as pl
from jax.experimental.pallas import tpu as pltpu


def _lstm_step(xh, c, w_fused_ref, b, H):
    """PyTorch-semantics LSTM cell, gate order i, f, g, o.

    `xh` is concat([x, h], axis=1); `w_fused_ref` is [W_ih.T ; W_hh.T] so the
    two gate matmuls collapse into one MXU issue.  One sigmoid and one tanh
    over the whole [1, 4H] row, gates picked out with static lane slices.
    """
    g = jnp.dot(xh, w_fused_ref[...], preferred_element_type=jnp.float32) + b
    s = jax.nn.sigmoid(g)       # single EUP pass over all 4H lanes
    t = jnp.tanh(g)             # single EUP pass over all 4H lanes
    i = s[:, 0:H]
    f = s[:, H:2 * H]
    gg = t[:, 2 * H:3 * H]
    o = s[:, 3 * H:4 * H]
    c_new = f * c + i * gg
    h_new = o * jnp.tanh(c_new)
    return h_new, c_new


def _attn_decoder_kernel(
    # packed activations / state
    x_ref,        # [1, I]   decoder input
    state_ref,    # [8, H]   rows: h1, c1, h2, c2, h3, c3, pad, pad
    enc_ref,      # [S, H]   encoder outputs
    # weights (pre-transposed to [in, out]; LSTM / linear heads fused host-side)
    pn1_w_ref,    # [I, H]
    pn2_w_ref,    # [H, H]
    attn1_w_ref,  # [H, H]   (no bias)
    attn2_w_ref,  # [H, H]
    attn3_w_ref,  # [1, H]   (no bias)
    l1_w_ref,     # [2H, 4H] = [W_ih.T ; W_hh.T] of lstm1
    l2_w_ref,     # [3H, 4H] = [W_ih.T ; W_hh.T] of lstm2
    l3_w_ref,     # [3H, 4H] = [W_ih.T ; W_hh.T] of lstm3
    lin_w_ref,    # [H, 2O]  = [linear1.T | linear2.T]
    bias_ref,     # [8, BW]  rows: pn1, pn2, attn2, l1, l2, l3, lin, pad
    # outputs
    state_out_ref,  # [8, H]        (aliased onto state_ref)
    misc_out_ref,   # [1, 2O + S]   [output | attn_weights]
):
    H = state_ref.shape[-1]
    O2 = lin_w_ref.shape[-1]

    # --- unpack bias slab (static slices, single DMA upstream) ---------------
    bias = bias_ref[...]
    pn1_b = bias[0:1, :H]
    pn2_b = bias[1:2, :H]
    attn2_b = bias[2:3, :H]
    l1_b = bias[3:4, :4 * H]
    l2_b = bias[4:5, :4 * H]
    l3_b = bias[5:6, :4 * H]
    lin_b = bias[6:7, :O2]

    # --- unpack state slab ----------------------------------------------------
    st = state_ref[...]
    h1, c1 = st[0:1, :], st[1:2, :]
    h2, c2 = st[2:3, :], st[3:4, :]
    h3, c3 = st[4:5, :], st[5:6, :]

    # --- pn1 -> relu -> dropout(id) -> pn2 -> relu -> dropout(id) -------------
    x = x_ref[...]
    po = jnp.maximum(
        jnp.dot(x, pn1_w_ref[...], preferred_element_type=jnp.float32) + pn1_b,
        0.0)
    po6 = jnp.maximum(
        jnp.dot(po, pn2_w_ref[...], preferred_element_type=jnp.float32) + pn2_b,
        0.0)

    # --- lstm1 (seq_len=1, batch=1) -------------------------------------------
    h1n, c1n = _lstm_step(jnp.concatenate([po6, h1], axis=1), c1,
                          l1_w_ref, l1_b, H)
    o2 = h1n                                                     # [1, H]

    # --- additive attention (lane-dense scores) --------------------------------
    enc = enc_ref[...]                                           # [S, H]
    way = jnp.dot(o2, attn1_w_ref[...],
                  preferred_element_type=jnp.float32)            # [1, H]
    uah = (jnp.dot(enc, attn2_w_ref[...],
                   preferred_element_type=jnp.float32)
           + attn2_b)                                            # [S, H]
    beta = jnp.tanh(way + uah)                                   # [S, H]
    # scores as a lane-dense row: [1, S] = attn3_w [1, H] · beta [S, H]^T (MXU NT)
    gamma = jax.lax.dot_general(
        attn3_w_ref[...], beta, (((1,), (1,)), ((), ())),
        preferred_element_type=jnp.float32)                      # [1, S]
    m = jnp.max(gamma, axis=1, keepdims=True)
    e = jnp.exp(gamma - m)
    aw = e / jnp.sum(e, axis=1, keepdims=True)                   # [1, S]
    attn_applied = jnp.dot(aw, enc,
                           preferred_element_type=jnp.float32)   # [1, H]

    # --- lstm2 / residual / lstm3 ----------------------------------------------
    o3 = jnp.concatenate([o2, attn_applied], axis=1)             # [1, 2H]
    h2n, c2n = _lstm_step(jnp.concatenate([o3, h2], axis=1), c2,
                          l2_w_ref, l2_b, H)
    o6 = jnp.concatenate([h2n, attn_applied], axis=1) + o3       # [1, 2H]
    h3n, c3n = _lstm_step(jnp.concatenate([o6, h3], axis=1), c3,
                          l3_w_ref, l3_b, H)
    o9 = h3n                                                     # [1, H]

    # --- fused linear1|linear2 head ---------------------------------------------
    out = (jnp.dot(o9, lin_w_ref[...], preferred_element_type=jnp.float32)
           + lin_b)                                              # [1, 2O]

    # --- packed stores (2 outputs total) -----------------------------------------
    state_out_ref[...] = jnp.concatenate(
        [h1n, c1n, h2n, c2n, h3n, c3n, st[6:8, :]], axis=0)      # [8, H]
    misc_out_ref[...] = jnp.concatenate([out, aw], axis=1)       # [1, 2O+S]


def pack_biases(biases, width):
    """Pack per-layer bias vectors into one [8, width] slab (one DMA)."""
    rows = []
    for b in biases:
        b = jnp.asarray(b, jnp.float32).reshape(1, -1)
        rows.append(jnp.pad(b, ((0, 0), (0, width - b.shape[1]))))
    while len(rows) < 8:
        rows.append(jnp.zeros((1, width), jnp.float32))
    return jnp.concatenate(rows, axis=0)


def init_params(key, input_size, hidden_size, output_size, scale=0.01):
    """Synthetic parameters in the kernel's fused layout.

    Mapping from PyTorch:
      pn*/attn*/linear* weights are transposed to [in, out];
      l*_w = [lstm.weight_ih_l0.T ; lstm.weight_hh_l0.T];
      lin_w = [linear1.weight.T | linear2.weight.T];
      bias_slab rows = pn1.b, pn2.b, attn2.b, (b_ih+b_hh) x3, [lin1.b | lin2.b].
    """
    H, I, O = hidden_size, input_size, output_size
    w_shapes = [
        ("pn1_w", (I, H)), ("pn2_w", (H, H)),
        ("attn1_w", (H, H)), ("attn2_w", (H, H)), ("attn3_w", (1, H)),
        ("l1_w", (2 * H, 4 * H)), ("l2_w", (3 * H, 4 * H)), ("l3_w", (3 * H, 4 * H)),
        ("lin_w", (H, 2 * O)),
    ]
    keys = jax.random.split(key, len(w_shapes) + 1)
    params = {name: scale * jax.random.normal(k, shp, jnp.float32)
              for (name, shp), k in zip(w_shapes, keys[:-1])}

    bw = max(4 * H, 2 * O, H)
    bkeys = jax.random.split(keys[-1], 7)
    bias_list = [
        scale * jax.random.normal(bkeys[0], (H,), jnp.float32),      # pn1.bias
        scale * jax.random.normal(bkeys[1], (H,), jnp.float32),      # pn2.bias
        scale * jax.random.normal(bkeys[2], (H,), jnp.float32),      # attn2.bias
        scale * jax.random.normal(bkeys[3], (4 * H,), jnp.float32),  # lstm1 b_ih+b_hh
        scale * jax.random.normal(bkeys[4], (4 * H,), jnp.float32),  # lstm2 b_ih+b_hh
        scale * jax.random.normal(bkeys[5], (4 * H,), jnp.float32),  # lstm3 b_ih+b_hh
        scale * jax.random.normal(bkeys[6], (2 * O,), jnp.float32),  # lin1.b|lin2.b
    ]
    params["bias_slab"] = pack_biases(bias_list, bw)
    return params


@jax.jit
def attn_decoder_forward(params, inp, h1, c1, h2, c2, h3, c3, encoder_outputs):
    """Mirrors AttnDecoderRNN.forward.  Returns
    (output, o11, h1, c1, h2, c2, h3, c3, attn_weights)."""
    H = h1.shape[-1]
    S = encoder_outputs.shape[0]
    O2 = params["lin_w"].shape[-1]
    O = O2 // 2

    # Pack the six recurrent-state tensors into one [8, H] slab (glue).
    state = jnp.concatenate(
        [t.reshape(1, H) for t in (h1, c1, h2, c2, h3, c3)]
        + [jnp.zeros((2, H), jnp.float32)], axis=0)

    args = (
        inp, state, encoder_outputs,
        params["pn1_w"], params["pn2_w"],
        params["attn1_w"], params["attn2_w"], params["attn3_w"],
        params["l1_w"], params["l2_w"], params["l3_w"], params["lin_w"],
        params["bias_slab"],
    )

    vmem = pl.BlockSpec(memory_space=pltpu.MemorySpace.VMEM)
    out_shape = (
        jax.ShapeDtypeStruct((8, H), jnp.float32),       # updated state slab
        jax.ShapeDtypeStruct((1, O2 + S), jnp.float32),  # [output | attn_weights]
    )
    state_out, misc = pl.pallas_call(
        _attn_decoder_kernel,
        out_shape=out_shape,
        in_specs=[vmem] * len(args),
        out_specs=tuple([vmem] * len(out_shape)),
        input_output_aliases={1: 0},   # state slab is updated in place
    )(*args)

    output = misc[:, :O2]              # cat(o10, o11)
    o11 = misc[:, O:O2]                # slice of the fused head output
    attn_weights = misc[:, O2:O2 + S]  # already lane-dense [1, S]
    ex = lambda r: state_out[r:r + 1, :].reshape(1, 1, H)
    return (output, o11, ex(0), ex(1), ex(2), ex(3), ex(4), ex(5), attn_weights)


if __name__ == "__main__":
    input_size, hidden_size, output_size, seq_len = 16, 32, 8, 8

    key = jax.random.PRNGKey(0)
    k_params, k_in, k_enc, *k_states = jax.random.split(key, 9)

    params = init_params(k_params, input_size, hidden_size, output_size)

    inp = jax.random.normal(k_in, (1, input_size), jnp.float32)
    encoder_outputs = jax.random.normal(k_enc, (seq_len, hidden_size), jnp.float32)
    h1, c1, h2, c2, h3, c3 = [
        0.1 * jax.random.normal(k, (1, 1, hidden_size), jnp.float32)
        for k in k_states[:6]
    ]

    outs = attn_decoder_forward(params, inp, h1, c1, h2, c2, h3, c3,
                                encoder_outputs)
    jax.block_until_ready(outs)

    output, o11, h1n, c1n, h2n, c2n, h3n, c3n, attn_weights = outs
    assert output.shape == (1, 2 * output_size)
    assert o11.shape == (1, output_size)
    assert h1n.shape == (1, 1, hidden_size) and c3n.shape == (1, 1, hidden_size)
    assert attn_weights.shape == (1, seq_len)
    # o11 must equal the second half of `output` (cat(o10, o11) semantics)
    assert bool(jnp.allclose(output[:, output_size:], o11))
    # softmax rows sum to 1
    assert abs(float(jnp.sum(attn_weights)) - 1.0) < 1e-4
    print("KERNEL_OK")
</pallas_src>

<mosaic_0001>
module attributes {stable_mosaic.version = 11 : i64} {
  func.func @_attn_decoder_kernel(%arg0: memref<1x16xf32, #tpu.memory_space<vmem>>, %arg1: memref<8x32xf32, #tpu.memory_space<vmem>>, %arg2: memref<8x32xf32, #tpu.memory_space<vmem>>, %arg3: memref<16x32xf32, #tpu.memory_space<vmem>>, %arg4: memref<32x32xf32, #tpu.memory_space<vmem>>, %arg5: memref<32x32xf32, #tpu.memory_space<vmem>>, %arg6: memref<32x32xf32, #tpu.memory_space<vmem>>, %arg7: memref<1x32xf32, #tpu.memory_space<vmem>>, %arg8: memref<64x128xf32, #tpu.memory_space<vmem>>, %arg9: memref<96x128xf32, #tpu.memory_space<vmem>>, %arg10: memref<96x128xf32, #tpu.memory_space<vmem>>, %arg11: memref<32x16xf32, #tpu.memory_space<vmem>>, %arg12: memref<8x128xf32, #tpu.memory_space<vmem>>, %arg13: memref<8x32xf32, #tpu.memory_space<vmem>>, %arg14: memref<1x24xf32, #tpu.memory_space<vmem>>) attributes {dimension_semantics = [], scalar_prefetch = 0 : i64, scratch_operands = 0 : i64, tpu.core_type = #tpu.core_type<tc>} {
    %c0 = arith.constant 0 : index
    %c0_0 = arith.constant 0 : index
    %0 = vector.load %arg12[%c0, %c0_0] : memref<8x128xf32, #tpu.memory_space<vmem>>, vector<8x128xf32>
    %1 = vector.extract_strided_slice %0 {offsets = [0, 0], sizes = [1, 32], strides = [1, 1]} : vector<8x128xf32> to vector<1x32xf32>
    %2 = vector.extract_strided_slice %0 {offsets = [1, 0], sizes = [1, 32], strides = [1, 1]} : vector<8x128xf32> to vector<1x32xf32>
    %3 = vector.extract_strided_slice %0 {offsets = [2, 0], sizes = [1, 32], strides = [1, 1]} : vector<8x128xf32> to vector<1x32xf32>
    %4 = vector.extract_strided_slice %0 {offsets = [3, 0], sizes = [1, 128], strides = [1, 1]} : vector<8x128xf32> to vector<1x128xf32>
    %5 = vector.extract_strided_slice %0 {offsets = [4, 0], sizes = [1, 128], strides = [1, 1]} : vector<8x128xf32> to vector<1x128xf32>
    %6 = vector.extract_strided_slice %0 {offsets = [5, 0], sizes = [1, 128], strides = [1, 1]} : vector<8x128xf32> to vector<1x128xf32>
    %7 = vector.extract_strided_slice %0 {offsets = [6, 0], sizes = [1, 16], strides = [1, 1]} : vector<8x128xf32> to vector<1x16xf32>
    %c0_1 = arith.constant 0 : index
    %c0_2 = arith.constant 0 : index
    %8 = vector.load %arg1[%c0_1, %c0_2] : memref<8x32xf32, #tpu.memory_space<vmem>>, vector<8x32xf32>
    %9 = vector.extract_strided_slice %8 {offsets = [0, 0], sizes = [1, 32], strides = [1, 1]} : vector<8x32xf32> to vector<1x32xf32>
    %10 = vector.extract_strided_slice %8 {offsets = [1, 0], sizes = [1, 32], strides = [1, 1]} : vector<8x32xf32> to vector<1x32xf32>
    %11 = vector.extract_strided_slice %8 {offsets = [2, 0], sizes = [1, 32], strides = [1, 1]} : vector<8x32xf32> to vector<1x32xf32>
    %12 = vector.extract_strided_slice %8 {offsets = [3, 0], sizes = [1, 32], strides = [1, 1]} : vector<8x32xf32> to vector<1x32xf32>
    %13 = vector.extract_strided_slice %8 {offsets = [4, 0], sizes = [1, 32], strides = [1, 1]} : vector<8x32xf32> to vector<1x32xf32>
    %14 = vector.extract_strided_slice %8 {offsets = [5, 0], sizes = [1, 32], strides = [1, 1]} : vector<8x32xf32> to vector<1x32xf32>
    %c0_3 = arith.constant 0 : index
    %c0_4 = arith.constant 0 : index
    %15 = vector.load %arg0[%c0_3, %c0_4] : memref<1x16xf32, #tpu.memory_space<vmem>>, vector<1x16xf32>
    %c0_5 = arith.constant 0 : index
    %c0_6 = arith.constant 0 : index
    %16 = vector.load %arg3[%c0_5, %c0_6] : memref<16x32xf32, #tpu.memory_space<vmem>>, vector<16x32xf32>
    %cst = arith.constant dense<0.000000e+00> : vector<1x32xf32>
    %17 = tpu.matmul %15, %16, %cst {dimension_numbers = #tpu.dot_dimension_numbers<[1], [0], [0], [1], [0, 0, 1, 1], [], []>} : vector<1x16xf32>, vector<16x32xf32>, vector<1x32xf32> -> vector<1x32xf32>
    %18 = arith.addf %17, %1 : vector<1x32xf32>
    %cst_7 = arith.constant 0.000000e+00 : f32
    %19 = vector.broadcast %cst_7 : f32 to vector<1x32xf32>
    %20 = arith.maximumf %18, %19 : vector<1x32xf32>
    %c0_8 = arith.constant 0 : index
    %c0_9 = arith.constant 0 : index
    %21 = vector.load %arg4[%c0_8, %c0_9] : memref<32x32xf32, #tpu.memory_space<vmem>>, vector<32x32xf32>
    %cst_10 = arith.constant dense<0.000000e+00> : vector<1x32xf32>
    %22 = tpu.matmul %20, %21, %cst_10 {dimension_numbers = #tpu.dot_dimension_numbers<[1], [0], [0], [1], [0, 0, 1, 1], [], []>} : vector<1x32xf32>, vector<32x32xf32>, vector<1x32xf32> -> vector<1x32xf32>
    %23 = arith.addf %22, %2 : vector<1x32xf32>
    %cst_11 = arith.constant 0.000000e+00 : f32
    %24 = vector.broadcast %cst_11 : f32 to vector<1x32xf32>
    %25 = arith.maximumf %23, %24 : vector<1x32xf32>
    %26 = tpu.concatenate %25, %9 in 1 : vector<1x32xf32>, vector<1x32xf32> -> vector<1x64xf32>
    %c0_12 = arith.constant 0 : index
    %c0_13 = arith.constant 0 : index
    %27 = vector.load %arg8[%c0_12, %c0_13] : memref<64x128xf32, #tpu.memory_space<vmem>>, vector<64x128xf32>
    %cst_14 = arith.constant dense<0.000000e+00> : vector<1x128xf32>
    %28 = tpu.matmul %26, %27, %cst_14 {dimension_numbers = #tpu.dot_dimension_numbers<[1], [0], [0], [1], [0, 0, 1, 1], [], []>} : vector<1x64xf32>, vector<64x128xf32>, vector<1x128xf32> -> vector<1x128xf32>
    %29 = arith.addf %28, %4 : vector<1x128xf32>
    %30 = arith.negf %29 : vector<1x128xf32>
    %31 = math.exp %30 : vector<1x128xf32>
    %cst_15 = arith.constant 1.000000e+00 : f32
    %32 = vector.broadcast %cst_15 : f32 to vector<1x128xf32>
    %33 = arith.addf %32, %31 : vector<1x128xf32>
    %34 = arith.divf %32, %33 : vector<1x128xf32>
    %35 = math.tanh %29 : vector<1x128xf32>
    %36 = vector.extract_strided_slice %34 {offsets = [0, 0], sizes = [1, 32], strides = [1, 1]} : vector<1x128xf32> to vector<1x32xf32>
    %37 = vector.extract_strided_slice %34 {offsets = [0, 32], sizes = [1, 32], strides = [1, 1]} : vector<1x128xf32> to vector<1x32xf32>
    %38 = vector.extract_strided_slice %35 {offsets = [0, 64], sizes = [1, 32], strides = [1, 1]} : vector<1x128xf32> to vector<1x32xf32>
    %39 = vector.extract_strided_slice %34 {offsets = [0, 96], sizes = [1, 32], strides = [1, 1]} : vector<1x128xf32> to vector<1x32xf32>
    %40 = arith.mulf %37, %10 : vector<1x32xf32>
    %41 = arith.mulf %36, %38 : vector<1x32xf32>
    %42 = arith.addf %40, %41 : vector<1x32xf32>
    %43 = math.tanh %42 : vector<1x32xf32>
    %44 = arith.mulf %39, %43 : vector<1x32xf32>
    %c0_16 = arith.constant 0 : index
    %c0_17 = arith.constant 0 : index
    %45 = vector.load %arg2[%c0_16, %c0_17] : memref<8x32xf32, #tpu.memory_space<vmem>>, vector<8x32xf32>
    %c0_18 = arith.constant 0 : index
    %c0_19 = arith.constant 0 : index
    %46 = vector.load %arg5[%c0_18, %c0_19] : memref<32x32xf32, #tpu.memory_space<vmem>>, vector<32x32xf32>
    %cst_20 = arith.constant dense<0.000000e+00> : vector<1x32xf32>
    %47 = tpu.matmul %44, %46, %cst_20 {dimension_numbers = #tpu.dot_dimension_numbers<[1], [0], [0], [1], [0, 0, 1, 1], [], []>} : vector<1x32xf32>, vector<32x32xf32>, vector<1x32xf32> -> vector<1x32xf32>
    %c0_21 = arith.constant 0 : index
    %c0_22 = arith.constant 0 : index
    %48 = vector.load %arg6[%c0_21, %c0_22] : memref<32x32xf32, #tpu.memory_space<vmem>>, vector<32x32xf32>
    %cst_23 = arith.constant dense<0.000000e+00> : vector<8x32xf32>
    %49 = tpu.matmul %45, %48, %cst_23 {dimension_numbers = #tpu.dot_dimension_numbers<[1], [0], [0], [1], [0, 0, 1, 1], [], []>} : vector<8x32xf32>, vector<32x32xf32>, vector<8x32xf32> -> vector<8x32xf32>
    %50 = vector.broadcast %3 : vector<1x32xf32> to vector<8x32xf32>
    %51 = arith.addf %49, %50 : vector<8x32xf32>
    %52 = vector.broadcast %47 : vector<1x32xf32> to vector<8x32xf32>
    %53 = arith.addf %52, %51 : vector<8x32xf32>
    %54 = math.tanh %53 : vector<8x32xf32>
    %c0_24 = arith.constant 0 : index
    %c0_25 = arith.constant 0 : index
    %55 = vector.load %arg7[%c0_24, %c0_25] : memref<1x32xf32, #tpu.memory_space<vmem>>, vector<1x32xf32>
    %cst_26 = arith.constant dense<0.000000e+00> : vector<1x8xf32>
    %56 = tpu.matmul %55, %54, %cst_26 {dimension_numbers = #tpu.dot_dimension_numbers<[1], [1], [0], [0], [0, 0, 1, 0], [], []>} : vector<1x32xf32>, vector<8x32xf32>, vector<1x8xf32> -> vector<1x8xf32>
    %cst_27 = arith.constant dense<0xFF800000> : vector<1xf32>
    %57 = vector.multi_reduction <maximumf>, %56, %cst_27 [1] : vector<1x8xf32> to vector<1xf32>
    %58 = vector.shape_cast %57 : vector<1xf32> to vector<1x1xf32>
    %59 = vector.broadcast %58 : vector<1x1xf32> to vector<1x8xf32>
    %60 = arith.subf %56, %59 : vector<1x8xf32>
    %61 = math.exp %60 : vector<1x8xf32>
    %cst_28 = arith.constant dense<0.000000e+00> : vector<1xf32>
    %62 = vector.multi_reduction <add>, %61, %cst_28 [1] : vector<1x8xf32> to vector<1xf32>
    %63 = vector.shape_cast %62 : vector<1xf32> to vector<1x1xf32>
    %64 = vector.broadcast %63 : vector<1x1xf32> to vector<1x8xf32>
    %65 = arith.divf %61, %64 : vector<1x8xf32>
    %cst_29 = arith.constant dense<0.000000e+00> : vector<1x32xf32>
    %66 = tpu.matmul %65, %45, %cst_29 {dimension_numbers = #tpu.dot_dimension_numbers<[1], [0], [0], [1], [0, 0, 1, 1], [], []>} : vector<1x8xf32>, vector<8x32xf32>, vector<1x32xf32> -> vector<1x32xf32>
    %67 = tpu.concatenate %44, %66 in 1 : vector<1x32xf32>, vector<1x32xf32> -> vector<1x64xf32>
    %68 = tpu.concatenate %67, %11 in 1 : vector<1x64xf32>, vector<1x32xf32> -> vector<1x96xf32>
    %c0_30 = arith.constant 0 : index
    %c0_31 = arith.constant 0 : index
    %69 = vector.load %arg9[%c0_30, %c0_31] : memref<96x128xf32, #tpu.memory_space<vmem>>, vector<96x128xf32>
    %cst_32 = arith.constant dense<0.000000e+00> : vector<1x128xf32>
    %70 = tpu.matmul %68, %69, %cst_32 {dimension_numbers = #tpu.dot_dimension_numbers<[1], [0], [0], [1], [0, 0, 1, 1], [], []>} : vector<1x96xf32>, vector<96x128xf32>, vector<1x128xf32> -> vector<1x128xf32>
    %71 = arith.addf %70, %5 : vector<1x128xf32>
    %72 = arith.negf %71 : vector<1x128xf32>
    %73 = math.exp %72 : vector<1x128xf32>
    %cst_33 = arith.constant 1.000000e+00 : f32
    %74 = vector.broadcast %cst_33 : f32 to vector<1x128xf32>
    %75 = arith.addf %74, %73 : vector<1x128xf32>
    %76 = arith.divf %74, %75 : vector<1x128xf32>
    %77 = math.tanh %71 : vector<1x128xf32>
    %78 = vector.extract_strided_slice %76 {offsets = [0, 0], sizes = [1, 32], strides = [1, 1]} : vector<1x128xf32> to vector<1x32xf32>
    %79 = vector.extract_strided_slice %76 {offsets = [0, 32], sizes = [1, 32], strides = [1, 1]} : vector<1x128xf32> to vector<1x32xf32>
    %80 = vector.extract_strided_slice %77 {offsets = [0, 64], sizes = [1, 32], strides = [1, 1]} : vector<1x128xf32> to vector<1x32xf32>
    %81 = vector.extract_strided_slice %76 {offsets = [0, 96], sizes = [1, 32], strides = [1, 1]} : vector<1x128xf32> to vector<1x32xf32>
    %82 = arith.mulf %79, %12 : vector<1x32xf32>
    %83 = arith.mulf %78, %80 : vector<1x32xf32>
    %84 = arith.addf %82, %83 : vector<1x32xf32>
    %85 = math.tanh %84 : vector<1x32xf32>
    %86 = arith.mulf %81, %85 : vector<1x32xf32>
    %87 = tpu.concatenate %86, %66 in 1 : vector<1x32xf32>, vector<1x32xf32> -> vector<1x64xf32>
    %88 = arith.addf %87, %67 : vector<1x64xf32>
    %89 = tpu.concatenate %88, %13 in 1 : vector<1x64xf32>, vector<1x32xf32> -> vector<1x96xf32>
    %c0_34 = arith.constant 0 : index
    %c0_35 = arith.constant 0 : index
    %90 = vector.load %arg10[%c0_34, %c0_35] : memref<96x128xf32, #tpu.memory_space<vmem>>, vector<96x128xf32>
    %cst_36 = arith.constant dense<0.000000e+00> : vector<1x128xf32>
    %91 = tpu.matmul %89, %90, %cst_36 {dimension_numbers = #tpu.dot_dimension_numbers<[1], [0], [0], [1], [0, 0, 1, 1], [], []>} : vector<1x96xf32>, vector<96x128xf32>, vector<1x128xf32> -> vector<1x128xf32>
    %92 = arith.addf %91, %6 : vector<1x128xf32>
    %93 = arith.negf %92 : vector<1x128xf32>
    %94 = math.exp %93 : vector<1x128xf32>
    %cst_37 = arith.constant 1.000000e+00 : f32
    %95 = vector.broadcast %cst_37 : f32 to vector<1x128xf32>
    %96 = arith.addf %95, %94 : vector<1x128xf32>
    %97 = arith.divf %95, %96 : vector<1x128xf32>
    %98 = math.tanh %92 : vector<1x128xf32>
    %99 = vector.extract_strided_slice %97 {offsets = [0, 0], sizes = [1, 32], strides = [1, 1]} : vector<1x128xf32> to vector<1x32xf32>
    %100 = vector.extract_strided_slice %97 {offsets = [0, 32], sizes = [1, 32], strides = [1, 1]} : vector<1x128xf32> to vector<1x32xf32>
    %101 = vector.extract_strided_slice %98 {offsets = [0, 64], sizes = [1, 32], strides = [1, 1]} : vector<1x128xf32> to vector<1x32xf32>
    %102 = vector.extract_strided_slice %97 {offsets = [0, 96], sizes = [1, 32], strides = [1, 1]} : vector<1x128xf32> to vector<1x32xf32>
    %103 = arith.mulf %100, %14 : vector<1x32xf32>
    %104 = arith.mulf %99, %101 : vector<1x32xf32>
    %105 = arith.addf %103, %104 : vector<1x32xf32>
    %106 = math.tanh %105 : vector<1x32xf32>
    %107 = arith.mulf %102, %106 : vector<1x32xf32>
    %c0_38 = arith.constant 0 : index
    %c0_39 = arith.constant 0 : index
    %108 = vector.load %arg11[%c0_38, %c0_39] : memref<32x16xf32, #tpu.memory_space<vmem>>, vector<32x16xf32>
    %cst_40 = arith.constant dense<0.000000e+00> : vector<1x16xf32>
    %109 = tpu.matmul %107, %108, %cst_40 {dimension_numbers = #tpu.dot_dimension_numbers<[1], [0], [0], [1], [0, 0, 1, 1], [], []>} : vector<1x32xf32>, vector<32x16xf32>, vector<1x16xf32> -> vector<1x16xf32>
    %110 = arith.addf %109, %7 : vector<1x16xf32>
    %111 = vector.extract_strided_slice %8 {offsets = [6, 0], sizes = [2, 32], strides = [1, 1]} : vector<8x32xf32> to vector<2x32xf32>
    %112 = tpu.concatenate %44, %42, %86, %84, %107, %105, %111 in 0 : vector<1x32xf32>, vector<1x32xf32>, vector<1x32xf32>, vector<1x32xf32>, vector<1x32xf32>, vector<1x32xf32>, vector<2x32xf32> -> vector<8x32xf32>
    %c0_41 = arith.constant 0 : index
    %c0_42 = arith.constant 0 : index
    %113 = vector.load %arg13[%c0_41, %c0_42] : memref<8x32xf32, #tpu.memory_space<vmem>>, vector<8x32xf32>
    tpu.vector_store %arg13[%c0_41, %c0_42], %112 {strides = array<i32>} : memref<8x32xf32, #tpu.memory_space<vmem>>, vector<8x32xf32>,
    %114 = tpu.concatenate %110, %65 in 1 : vector<1x16xf32>, vector<1x8xf32> -> vector<1x24xf32>
    %c0_43 = arith.constant 0 : index
    %c0_44 = arith.constant 0 : index
    %115 = vector.load %arg14[%c0_43, %c0_44] : memref<1x24xf32, #tpu.memory_space<vmem>>, vector<1x24xf32>
    tpu.vector_store %arg14[%c0_43, %c0_44], %114 {strides = array<i32>} : memref<1x24xf32, #tpu.memory_space<vmem>>, vector<1x24xf32>,
    return
  }
}

</mosaic_0001>

<bundles_post_ra>
// kernel: attn_decoder_forward.1
= control target key start
LH: loop header
LB: loop body
LE: loop exit
PB: predicated region body
PF: predicated region fallthrough
CT: control target
= control target key end

     0   :  { %20 = vsyncpa [#allocation3], 0  ;;  %s2090_s0 = inlined_call_operand.vmem [shape: f32[1,16], index: 0, kind: input, shape index: {}]   ;;  %s2091_s1 = inlined_call_operand.vmem [shape: f32[8,32], index: 1, kind: input, shape index: {}, may-alias: {1,13}]   ;;  %s2092_s2 = inlined_call_operand.vmem [shape: f32[8,32], index: 2, kind: input, shape index: {}]   ;;  %s2093_s3 = inlined_call_operand.hbm [shape: f32[16,32], index: 3, kind: input, shape index: {}]   ;;  %s2094_s4 = inlined_call_operand.hbm [shape: f32[32,32], index: 4, kind: input, shape index: {}]   ;;  %s2095_s5 = inlined_call_operand.hbm [shape: f32[32,32], index: 5, kind: input, shape index: {}]   ;;  %s2096_s6 = inlined_call_operand.hbm [shape: f32[32,32], index: 6, kind: input, shape index: {}]   ;;  %s2097_s7 = inlined_call_operand.hbm [shape: f32[1,32], index: 7, kind: input, shape index: {}]   ;;  %s2098_s8 = inlined_call_operand.hbm [shape: f32[64,128], index: 8, kind: input, shape index: {}]   ;;  %s2099_s9 = inlined_call_operand.vmem [shape: f32[96,128], index: 9, kind: input, shape index: {}]   ;;  %s2100_s10 = inlined_call_operand.hbm [shape: f32[96,128], index: 10, kind: input, shape index: {}]   ;;  %s2101_s11 = inlined_call_operand.vmem [shape: f32[32,16], index: 11, kind: input, shape index: {}]   ;;  %s2102_s12 = inlined_call_operand.hbm [shape: f32[8,128], index: 12, kind: input, shape index: {}]   ;;  %s2103_s13 = inlined_call_operand.vmem [shape: f32[8,32], index: 13, kind: output, shape index: {0}, may-alias: {1,13}]   ;;  %s2104_s14 = inlined_call_operand.vmem [shape: f32[1,24], index: 14, kind: output, shape index: {1}]  }
   0x1   :  { %21 = vsyncpa [#allocation5], 0 }
   0x2   :  { %22 = vsyncpa [#allocation8], 0 }
   0x3   :  { %23 = vsyncpa [#allocation11], 0 }
   0x4   :  { %24 = vsyncpa [#allocation14], 0  ;;  %s1670_s29 = smov [#allocation4]   ;;  %s1671_s15 = smov [#allocation7]  }
   0x5   :  { %s48_s30 = sshll.u32 %s1670_s29, 4  ;;  %s72_s16 = sshll.u32 %s1671_s15, 4  ;;  %s49_s30 = int_to_ptr.vmem [resolvable:$true] %s48_s30  ;;  %s1762_s16 = int_to_ptr.vmem [resolvable:$true] %s72_s16 }
   0x6   :  { %s1484_s19 = scalar_lea.hbm %s2094_s4, 512 }
   0x7   :  { %p1485_p0 = scmp.ne.s32.totalorder %s2094_s4, %s1484_s19  ;;  %p1488_p1 = scmp.lt.u32.totalorder %s1484_s19, %s2094_s4 }
   0x9   :  { %p1490_p2 = pnand %p1488_p1, %p1485_p0 }
   0xb   :  { %1493 = shalt.err (!%p1490_p2)
}
   0xc   :  { %s1494_s24 = scalar_lea.vmem %s49_s30, 512  ;;  %p1499_p4 = scmp.lt.s32.totalorder %s49_s30, %s49_s30 }
   0xd   :  { %p1495_p3 = scmp.ne.s32.totalorder %s49_s30, %s1494_s24  ;;  %p1500_p5 = scmp.lt.s32.totalorder %s1494_s24, %s1494_s24 }
   0xf   :  { %p1501_p6 = por %p1500_p5, %p1499_p4 }
  0x11   :  { %p1502_p7 = pnand %p1501_p6, %p1495_p3 }
  0x13   :  { %1505 = shalt.err (!%p1502_p7)
}
  0x14   :  { %s1672_s25 = smov 128   ;;  %s1673_s26 = smov 8  }
  0x15   :  { %54 = dma.hbm_to_vmem [thread:$0]  %s2094_s4, 512, %s49_s30, [#allocation5], %s1672_s25, %s1672_s25, %s1673_s26  }
  0x16   :  { %s1506_s17 = scalar_lea.hbm %s2096_s6, 512 }
  0x17   :  { %p1507_p8 = scmp.ne.s32.totalorder %s2096_s6, %s1506_s17  ;;  %p1510_p9 = scmp.lt.u32.totalorder %s1506_s17, %s2096_s6 }
  0x19   :  { %p1512_p10 = pnand %p1510_p9, %p1507_p8 }
  0x1b   :  { %1515 = shalt.err (!%p1512_p10)
}
  0x1c   :  { %s1516_s22 = scalar_lea.vmem %s1762_s16, 512  ;;  %p1521_p12 = scmp.lt.s32.totalorder %s1762_s16, %s1762_s16 }
  0x1d   :  { %p1517_p11 = scmp.ne.s32.totalorder %s1762_s16, %s1516_s22  ;;  %p1522_p13 = scmp.lt.s32.totalorder %s1516_s22, %s1516_s22 }
  0x1f   :  { %p1523_p0 = por %p1522_p13, %p1521_p12 }
  0x21   :  { %p1524_p1 = pnand %p1523_p0, %p1517_p11 }
  0x23   :  { %1527 = shalt.err (!%p1524_p1)
}
  0x24   :  { %78 = dma.hbm_to_vmem [thread:$0]  %s2096_s6, 512, %s1762_s16, [#allocation8], %s1672_s25, %s1672_s25, %s1673_s26  }
  0x25   :  { %s1674_s23 = smov [#allocation10]   ;;  %s1675_s27 = smov [#allocation2]  }
  0x26   :  { %s94_s24 = sshll.u32 %s1674_s23, 4  ;;  %s36_s28 = sshll.u32 %s1675_s27, 4  ;;  %s95_s24 = int_to_ptr.vmem [resolvable:$true] %s94_s24  ;;  %s1799_s28 = int_to_ptr.vmem [resolvable:$true] %s36_s28 }
  0x27   :  { %s1528_s17 = scalar_lea.hbm %s2098_s8, 1024 }
  0x28   :  { %p1529_p2 = scmp.ne.s32.totalorder %s2098_s8, %s1528_s17  ;;  %p1532_p3 = scmp.lt.u32.totalorder %s1528_s17, %s2098_s8 }
  0x2a   :  { %p1534_p4 = pnand %p1532_p3, %p1529_p2 }
  0x2c   :  { %1537 = shalt.err (!%p1534_p4)
}
  0x2d   :  { %s1538_s6 = scalar_lea.vmem %s95_s24, 1024  ;;  %p1543_p6 = scmp.lt.s32.totalorder %s95_s24, %s95_s24 }
  0x2e   :  { %p1539_p5 = scmp.ne.s32.totalorder %s95_s24, %s1538_s6  ;;  %p1544_p7 = scmp.lt.s32.totalorder %s1538_s6, %s1538_s6 }
  0x30   :  { %p1545_p8 = por %p1544_p7, %p1543_p6 }
  0x32   :  { %p1546_p9 = pnand %p1545_p8, %p1539_p5 }
  0x34   :  { %1549 = shalt.err (!%p1546_p9)
}
  0x35   :  { %100 = dma.hbm_to_vmem [thread:$0]  %s2098_s8, 1024, %s95_s24, [#allocation11], %s1672_s25, %s1672_s25, %s1673_s26  }
  0x36   :  { %s1550_s23 = scalar_lea.hbm %s2093_s3, 256 }
  0x37   :  { %p1551_p10 = scmp.ne.s32.totalorder %s2093_s3, %s1550_s23  ;;  %p1554_p11 = scmp.lt.u32.totalorder %s1550_s23, %s2093_s3 }
  0x39   :  { %p1556_p12 = pnand %p1554_p11, %p1551_p10 }
  0x3b   :  { %1559 = shalt.err (!%p1556_p12)
}
  0x3c   :  { %s1560_s18 = scalar_lea.vmem %s1799_s28, 256  ;;  %p1565_p0 = scmp.lt.s32.totalorder %s1799_s28, %s1799_s28 }
  0x3d   :  { %p1561_p13 = scmp.ne.s32.totalorder %s1799_s28, %s1560_s18  ;;  %p1566_p1 = scmp.lt.s32.totalorder %s1560_s18, %s1560_s18 }
  0x3f   :  { %p1567_p2 = por %p1566_p1, %p1565_p0 }
  0x41   :  { %p1568_p3 = pnand %p1567_p2, %p1561_p13 }
  0x43   :  { %1571 = shalt.err (!%p1568_p3)
}
  0x44   :  { %42 = dma.hbm_to_vmem [thread:$0]  %s2093_s3, 256, %s1799_s28, [#allocation3], %s1672_s25, %s1672_s25, %s1673_s26  }
  0x45   :  { %s1676_s19 = smov [#allocation6]   ;;  %s1677_s21 = smov [#allocation9]  }
  0x46   :  { %s60_s20 = sshll.u32 %s1676_s19, 4  ;;  %s85_s6 = sshll.u32 %s1677_s21, 4  ;;  %s61_s20 = int_to_ptr.vmem [resolvable:$true] %s60_s20  ;;  %s86_s6 = int_to_ptr.vmem [resolvable:$true] %s85_s6 }
  0x47   :  { %s1572_s4 = scalar_lea.hbm %s2095_s5, 512 }
  0x48   :  { %p1573_p4 = scmp.ne.s32.totalorder %s2095_s5, %s1572_s4  ;;  %p1576_p5 = scmp.lt.u32.totalorder %s1572_s4, %s2095_s5 }
  0x4a   :  { %p1578_p6 = pnand %p1576_p5, %p1573_p4 }
  0x4c   :  { %1581 = shalt.err (!%p1578_p6)
}
  0x4d   :  { %s1582_s3 = scalar_lea.vmem %s61_s20, 512  ;;  %p1587_p8 = scmp.lt.s32.totalorder %s61_s20, %s61_s20 }
  0x4e   :  { %p1583_p7 = scmp.ne.s32.totalorder %s61_s20, %s1582_s3  ;;  %p1588_p9 = scmp.lt.s32.totalorder %s1582_s3, %s1582_s3 }
  0x50   :  { %p1589_p10 = por %p1588_p9, %p1587_p8 }
  0x52   :  { %p1590_p11 = pnand %p1589_p10, %p1583_p7 }
  0x54   :  { %1593 = shalt.err (!%p1590_p11)
}
  0x55   :  { %66 = dma.hbm_to_vmem [thread:$0]  %s2095_s5, 512, %s61_s20, [#allocation5], %s1672_s25, %s1672_s25, %s1673_s26  }
  0x56   :  { %s1594_s8 = scalar_lea.hbm %s2097_s7, 16 }
  0x57   :  { %p1595_p12 = scmp.ne.s32.totalorder %s2097_s7, %s1594_s8  ;;  %p1598_p13 = scmp.lt.u32.totalorder %s1594_s8, %s2097_s7 }
  0x59   :  { %p1600_p0 = pnand %p1598_p13, %p1595_p12 }
  0x5b   :  { %1603 = shalt.err (!%p1600_p0)
}
  0x5c   :  { %s1604_s22 = scalar_lea.vmem %s86_s6, 16  ;;  %s1608_s4 = scalar_lea.vmem %s86_s6, 32 }
  0x5d   :  { %p1605_p1 = scmp.ne.s32.totalorder %s86_s6, %s1604_s22  ;;  %p1609_p2 = scmp.lt.s32.totalorder %s86_s6, %s86_s6 }
  0x5e   :  { %p1610_p3 = scmp.lt.s32.totalorder %s1608_s4, %s1604_s22 }
  0x60   :  { %p1611_p4 = por %p1610_p3, %p1609_p2 }
  0x62   :  { %p1612_p5 = pnand %p1611_p4, %p1605_p1 }
  0x64   :  { %1615 = shalt.err (!%p1612_p5)
}
  0x65   :  { %88 = dma.hbm_to_vmem [thread:$0]  %s2097_s7, 16, %s86_s6, [#allocation8]  }
  0x66   :  { %s1678_s30 = smov [#allocation12]   ;;  %s1679_s27 = smov [#allocation13]  }
  0x67   :  { %s108_s23 = sshll.u32 %s1678_s30, 4  ;;  %s123_s29 = sshll.u32 %s1679_s27, 4  ;;  %s109_s23 = int_to_ptr.vmem [resolvable:$true] %s108_s23  ;;  %s124_s29 = int_to_ptr.vmem [resolvable:$true] %s123_s29 }
  0x68   :  { %s1616_s15 = scalar_lea.hbm %s2100_s10, 1536 }
  0x69   :  { %p1617_p6 = scmp.ne.s32.totalorder %s2100_s10, %s1616_s15  ;;  %p1620_p7 = scmp.lt.u32.totalorder %s1616_s15, %s2100_s10 }
  0x6b   :  { %p1622_p8 = pnand %p1620_p7, %p1617_p6 }
  0x6d   :  { %1625 = shalt.err (!%p1622_p8)
}
  0x6e   :  { %s1626_s7 = scalar_lea.vmem %s109_s23, 1536  ;;  %p1631_p10 = scmp.lt.s32.totalorder %s109_s23, %s109_s23 }
  0x6f   :  { %p1627_p9 = scmp.ne.s32.totalorder %s109_s23, %s1626_s7  ;;  %p1632_p11 = scmp.lt.s32.totalorder %s1626_s7, %s1626_s7 }
  0x71   :  { %p1633_p12 = por %p1632_p11, %p1631_p10 }
  0x73   :  { %p1634_p13 = pnand %p1633_p12, %p1627_p9 }
  0x75   :  { %1637 = shalt.err (!%p1634_p13)
}
  0x76   :  { %114 = dma.hbm_to_vmem [thread:$0]  %s2100_s10, 1536, %s109_s23, [#allocation11], %s1672_s25, %s1672_s25, %s1673_s26  }
  0x77   :  { %s1638_s22 = scalar_lea.hbm %s2102_s12, 128 }
  0x78   :  { %p1639_p0 = scmp.ne.s32.totalorder %s2102_s12, %s1638_s22  ;;  %p1642_p1 = scmp.lt.u32.totalorder %s1638_s22, %s2102_s12 }
  0x7a   :  { %p1644_p2 = pnand %p1642_p1, %p1639_p0 }
  0x7c   :  { %1647 = shalt.err (!%p1644_p2)
}
  0x7d   :  { %s1648_s27 = scalar_lea.vmem %s124_s29, 128  ;;  %p1653_p4 = scmp.lt.s32.totalorder %s124_s29, %s124_s29 }
  0x7e   :  { %p1649_p3 = scmp.ne.s32.totalorder %s124_s29, %s1648_s27  ;;  %p1654_p5 = scmp.lt.s32.totalorder %s1648_s27, %s1648_s27 }
  0x80   :  { %p1655_p6 = por %p1654_p5, %p1653_p4 }
  0x82   :  { %p1656_p7 = pnand %p1655_p6, %p1649_p3 }
  0x84   :  { %1659 = shalt.err (!%p1656_p7)
}
  0x85   :  { %126 = dma.hbm_to_vmem [thread:$0]  %s2102_s12, 128, %s124_s29, [#allocation14]  }
  0x86   :  { %1660 = dma.done.wait [#allocation3], 256  }
  0x87   :  { %1661 = vsyncadd [#allocation3], 4294967040 }
  0x88   :  { %1662 = dma.done.wait [#allocation5], 1024  }
  0x89   :  { %1663 = vsyncadd [#allocation5], 4294966272 }
  0x8a   :  { %1664 = dma.done.wait [#allocation8], 528  }
  0x8b   :  { %1665 = vsyncadd [#allocation8], 4294966768 }
  0x8c   :  { %1666 = dma.done.wait [#allocation11], 2560  }
  0x8d   :  { %1667 = vsyncadd [#allocation11], 4294964736 }
  0x8e   :  { %1668 = dma.done.wait [#allocation14], 128  }
  0x8f   :  { %1669 = vsyncadd [#allocation14], 4294967168  ;;  %v1680_v0 = vmov 0.0|0.0   ;;  %vm1681_vm0 = vmmov 0   ;;  %v1682_v1 = vmov 0.0   ;;  %v154_v2 = vld [vmem:[#allocation2] sm:$0xff] }
  0x90   :  { %1362 = vmatprep.subr.bf16.mxu0 %v1680_v0  ;;  %1232 = vmatprep.mubr.msk.f32.mxu0 %vm1681_vm0, %v1682_v1  ;;  %v155_v3 = vld [vmem:[#allocation2 + $0x8] sm:$0xff]  ;;  %v231_v5 = vld [vmem:[#allocation4] sm:$0xff]  ;;  %v232_v6 = vld [vmem:[#allocation4 + $0x8] sm:$0xff]  ;;  %vm156_vm1 = vcmask 130048   ;;  %vm238_vm2 = vcmask 261120   ;;  %vm328_vm3 = vcmask 523264  }
  0x91   :  { %1365 = vmatprep.subr.bf16.mxu1 %v1680_v0  ;;  %1243 = vmatprep.mubr.msk.f32.mxu1 %vm1681_vm0, %v1682_v1  ;;  %v1363_v4 = vpack.c.bf16 %v155_v3, %v154_v2  ;;  %v1366_v7 = vpack.c.bf16 %v232_v6, %v231_v5  ;;  %v153_v8 = vld [vmem:[%s2090_s0] sm:$0x1]  ;;  %v234_v10 = vld [vmem:[#allocation4 + $0x18] sm:$0xff]  ;;  %v318_v13 = vld [vmem:[#allocation10] sm:$0xff]  ;;  %s1683_s0 = smov 32   ;;  %vm674_vm4 = vcmask 57344  }
  0x92   :  { %v233_v9 = vld [vmem:[#allocation4 + $0x10] sm:$0xff]  ;;  %v321_v17 = vld [vmem:[#allocation10 + $0x18] sm:$0xff]  ;;  %v322_v19 = vld [vmem:[#allocation10 + $0x20] sm:$0xff]  ;;  %vm686_vm5 = vcmask 64512   ;;  %vm785_vm6 = vcmask 785408   ;;  %s1685_s7 = smov 16  }
  0x93   :  { %1364 = vmatpush3.bf16.msra.mxu0 %v1363_v4  ;;  %1367 = vmatpush3.bf16.msra.mxu1 %v1366_v7  ;;  %v1369_v11 = vpack.c.bf16 %v234_v10, %v233_v9  ;;  %v1908_v12 = vld [vmem:[%s2091_s1] sm:$0xff]  ;;  %v1915_v22 = vld [vmem:[#allocation13] sm:$0xff]  ;;  %v325_v28 = vld [vmem:[#allocation10 + $0x38] sm:$0xff]  ;;  %s1684_s1 = smov 64   ;;  %vm1116_vm7 = vcmask 1040384   ;;  %vm1118_vm8 = vcmask 1041408  }
  0x94   :  { %1371 = vmatprep.subr.bf16.mxu0 %v1680_v0  ;;  %1368 = vmatprep.subr.bf16.mxu1 %v1680_v0  ;;  %v319_v14 = vld [vmem:[#allocation10 + $0x8] sm:$0xff]  ;;  %v320_v16 = vld [vmem:[#allocation10 + $0x10] sm:$0xff]  ;;  %v409_v30 = vrot.slane %v1908_v12, 1  ;;  %v236_v31 = vrot.slane %v1915_v22, 1  ;;  %v326_v38 = vrot.slane %v1915_v22, 3  ;;  %v431_v53 = vld [vmem:[#allocation6] sm:$0xff] }
  0x95   :  { %314 = vrot.lane.b32.xlu0 %v1908_v12, %s1683_s0  ;;  %v1372_v15 = vpack.c.bf16 %v319_v14, %v318_v13  ;;  %v1375_v18 = vpack.c.bf16 %v321_v17, %v320_v16  ;;  %v323_v20 = vld [vmem:[#allocation10 + $0x28] sm:$0xff]  ;;  %v324_v27 = vld [vmem:[#allocation10 + $0x30] sm:$0xff]  ;;  %v510_v62 = vld [vmem:[#allocation7] sm:$0xff]  ;;  %vm1120_vm9 = vcmask 1042432   ;;  %vm1122_vm10 = vcmask 1043456  }
  0x96   :  { %1233 = vmatmul.mubr.msk.f32.vlgmr.msra.gmra.mrb[0].mxu0 %vm156_vm1, %v153_v8  ;;  %v1378_v21 = vpack.c.bf16 %v323_v20, %v322_v19  ;;  %v1381_v29 = vpack.c.bf16 %v325_v28, %v324_v27  ;;  %410 = vrot.lane.b32.xlu1 %v409_v30, %s1683_s0  ;;  %v432_v54 = vld [vmem:[#allocation6 + $0x8] sm:$0xff]  ;;  %v433_v55 = vld [vmem:[#allocation6 + $0x10] sm:$0xff]  ;;  %v434_v57 = vld [vmem:[#allocation6 + $0x18] sm:$0xff]  ;;  %v514_v8 = vlaneseq  ;;  %vm1124_vm11 = vcmask 1044480  }
  0x97   :  { %1262 = vmatprep.mubr.msk.f32.mxu0 %vm1681_vm0, %v1682_v1  ;;  %1370 = vmatpush3.bf16.msra.mxu1 %v1369_v11  ;;  %v1384_v56 = vpack.c.bf16 %v432_v54, %v431_v53  ;;  %v1387_v58 = vpack.c.bf16 %v434_v57, %v433_v55  ;;  %v511_v63 = vld [vmem:[#allocation7 + $0x8] sm:$0xff]  ;;  %v512_v3 = vld [vmem:[#allocation7 + $0x10] sm:$0xff]  ;;  %v513_v4 = vld [vmem:[#allocation7 + $0x18] sm:$0xff]  ;;  %v866_v55 = vrot.slane %v1908_v12, 3  ;;  %vm1126_vm12 = vcmask 1045504  }
  0x98   :  { %1383 = vmatprep.subr.bf16.mxu1 %v1680_v0  ;;  %1373 = vmatpush3.bf16.msra.mxu0 %v1372_v15  ;;  %v1390_v2 = vpack.c.bf16 %v511_v63, %v510_v62  ;;  %v1393_v6 = vpack.c.bf16 %v513_v4, %v512_v3  ;;  %v430_v7 = vld [vmem:[%s2092_s2] sm:$0xff]  ;;  %v515_v9 = vshrl.u32 %v514_v8, 7  ;;  %v782_v53 = vld [vmem:[%s2099_s9 + $0x58] sm:$0xff]  ;;  %v783_v63 = vrot.slane %v1915_v22, 4 }
  0x99   :  { %1374 = vmatprep.subr.bf16.mxu0 %v1680_v0  ;;  %vm1137_vm13 = vcmask 188416  }
  0x9a   :  { %v516_v13 = vsub.s32 2, %v515_v9  ;;  %v593_v14 = vsub.s32 0, %v515_v9 }
  0x9c   :  { %1376 = vmatpush3.bf16.msra.mxu0 %v1375_v18  ;;  %v517_v15 = vrot.slane %v1915_v22, %v516_v13 }
  0x9d   :  { %1377 = vmatprep.subr.bf16.mxu0 %v1680_v0 }
  0xa0   :  { %1379 = vmatpush3.bf16.msra.mxu0 %v1378_v21 }
  0xa1   :  { %1380 = vmatprep.subr.bf16.mxu0 %v1680_v0 }
  0xa4   :  { %1382 = vmatpush3.bf16.msra.mxu0 %v1381_v29 }
  0xa5   :  { %1287 = vmatprep.subr.mxu0 %v1682_v1 }
 0x107   :  { %v315_v35 = vpop.permute.xlu0 %314 }
 0x108   :  { %v411_v49 = vpop.permute.xlu1 %410 }
 0x169   :  { %v226_v23 = vpop.f32.mrb[0].mxu0 }
 0x16a   :  { %v227_v24 = vadd.f32 %v226_v23, %v1915_v22  ;;  %v1234_v25 = vpop.f32.mrb[1].mxu0  ;;  %v597_v23 = vld [vmem:[#allocation9] sm:$0x1] }
 0x16c   :  { %v230_v26 = vmax.f32 %v227_v24, 0.0 }
 0x16e   :  { %1244 = vmatmul.mubr.msk.f32.vlgmr.msra.gmra.mrb[0].mxu1 %vm238_vm2, %v230_v26 }
 0x16f   :  { %1273 = vmatprep.mubr.msk.f32.mxu1 %vm1681_vm0, %v1682_v1  ;;  %1385 = vmatpush3.bf16.msra.mxu1 %v1384_v56 }
 0x170   :  { %1386 = vmatprep.subr.bf16.mxu1 %v1680_v0 }
 0x173   :  { %1388 = vmatpush3.bf16.msra.mxu1 %v1387_v58 }
 0x174   :  { %1389 = vmatprep.subr.bf16.mxu1 %v1680_v0 }
 0x241   :  { %v308_v32 = vpop.f32.mrb[0].mxu1 }
 0x242   :  { %v309_v33 = vadd.f32 %v308_v32, %v236_v31  ;;  %v1245_v34 = vpop.f32.mrb[1].mxu1 }
 0x244   :  { %v312_v36 = vmax.f32 %v309_v33, 0.0 }
 0x246   :  { %v317_v37 = vsel %vm238_vm2, %v312_v36, %v315_v35  ;;  %v766_v35 = vrot.slane %v1908_v12, 2  ;;  %v771_v36 = vld [vmem:[%s2099_s9] sm:$0xff] }
 0x247   :  { %1263 = vmatmul.mubr.msk.f32.vlgmr.msra.gmra.mrb[2].mxu0 %vm328_vm3, %v317_v37  ;;  %v772_v37 = vld [vmem:[%s2099_s9 + $0x8] sm:$0xff] }
 0x248   :  { %1289 = vmatprep.mubr.msk.f32.mxu0 %vm1681_vm0, %v1682_v1 }
 0x31a   :  { %v398_v39 = vpop.f32.mrb[2].mxu0 }
 0x31b   :  { %v399_v40 = vadd.f32 %v398_v39, %v326_v38  ;;  %v1264_v41 = vpop.f32.mrb[3].mxu0  ;;  %v773_v38 = vld [vmem:[%s2099_s9 + $0x10] sm:$0xff]  ;;  %v1396_v39 = vpack.c.bf16 %v772_v37, %v771_v36 }
 0x31c   :  { %v909_v36 = vld [vmem:[#allocation12 + $0x58] sm:$0xff] }
 0x31d   :  { %1454 = vtanh.f32 %v399_v40  ;;  %v1155_v43 = vmul.f32 -1.442695, %v399_v40  ;;  %v774_v40 = vld [vmem:[%s2099_s9 + $0x18] sm:$0xff] }
 0x31e   :  { %v1399_v41 = vpack.c.bf16 %v774_v40, %v773_v38  ;;  %v992_v38 = vrot.slane %v1908_v12, 5 }
 0x31f   :  { %1456 = vpow2.f32 %v1155_v43  ;;  %v776_v43 = vld [vmem:[%s2099_s9 + $0x28] sm:$0xff] }
 0x327   :  { %v1455_v42 = vpop.eup %1454 }
 0x328   :  { %415 = vrot.lane.b32.xlu0 %v1455_v42, %s1684_s1  ;;  %v775_v42 = vld [vmem:[%s2099_s9 + $0x20] sm:$0xff] }
 0x329   :  { %v1457_v44 = vpop.eup %1456 }
 0x32a   :  { %v405_v45 = vadd.f32 1.0, %v1457_v44  ;;  %v1402_v44 = vpack.c.bf16 %v776_v43, %v775_v42 }
 0x32c   :  { %1458 = vrcp.f32 %v405_v45  ;;  %v777_v45 = vld [vmem:[%s2099_s9 + $0x30] sm:$0xff] }
 0x336   :  { %v1459_v46 = vpop.eup %1458 }
 0x337   :  { %v413_v50 = vmul.f32 %v1459_v46, %v411_v49  ;;  %v780_v49 = vld [vmem:[%s2099_s9 + $0x48] sm:$0xff] }
 0x39a   :  { %v416_v47 = vpop.permute.xlu0 %415 }
 0x39b   :  { %v418_v48 = vmul.f32 %v1459_v46, %v416_v47 }
 0x39d   :  { %420 = vrot.lane.b32.xlu1 %v418_v48, %s1683_s0  ;;  %v779_v48 = vld [vmem:[%s2099_s9 + $0x40] sm:$0xff] }
 0x40f   :  { %v421_v51 = vpop.permute.xlu1 %420 }
 0x410   :  { %v1932_v52 = vadd.f32 %v421_v51, %v413_v50  ;;  %v1408_v50 = vpack.c.bf16 %v780_v49, %v779_v48  ;;  %v781_v51 = vld [vmem:[%s2099_s9 + $0x50] sm:$0xff] }
 0x411   :  { %v1411_v54 = vpack.c.bf16 %v782_v53, %v781_v51 }
 0x412   :  { %1460 = vtanh.f32 %v1932_v52 }
 0x41c   :  { %v1461_v59 = vpop.eup %1460 }
 0x41d   :  { %426 = vrot.lane.b32.xlu0 %v1461_v59, %s1684_s1 }
 0x48f   :  { %v427_v60 = vpop.permute.xlu0 %426 }
 0x490   :  { %v1938_v61 = vmul.f32 %v1459_v46, %v427_v60  ;;  %v778_v46 = vld [vmem:[%s2099_s9 + $0x38] sm:$0xff] }
 0x491   :  { %v1405_v47 = vpack.c.bf16 %v778_v46, %v777_v45  ;;  %v910_v46 = vrot.slane %v1915_v22, 5 }
 0x492   :  { %436 = vrot.lane.b32.xlu1 %v1938_v61, %s1683_s0 }
 0x504   :  { %v1942_v5 = vpop.permute.xlu1 %436 }
 0x505   :  { %1274 = vmatmul.mubr.msk.f32.vlgmr.msra.gmra.mrb[2].mxu1 %vm238_vm2, %v1942_v5 }
 0x506   :  { %1391 = vmatpush3.bf16.msra.mxu1 %v1390_v2  ;;  %1284 = vmatprep.mubr.msk.f32.mxu1 %vm1681_vm0, %v1682_v1 }
 0x507   :  { %1392 = vmatprep.subr.bf16.mxu1 %v1680_v0 }
 0x50a   :  { %1394 = vmatpush3.bf16.msra.mxu1 %v1393_v6 }
 0x50b   :  { %1395 = vmatprep.subr.bf16.mxu1 %v1680_v0 }
 0x50d   :  { %1285 = vmatmul.mubr.msk.f32.vlgmr.msra.gmra.mrb[4].mxu1 %vm238_vm2, %v430_v7 }
 0x50e   :  { %1321 = vmatprep.mubr.msk.f32.mxu1 %vm1681_vm0, %v1682_v1  ;;  %1397 = vmatpush3.bf16.msra.mxu1 %v1396_v39 }
 0x50f   :  { %1398 = vmatprep.subr.bf16.mxu1 %v1680_v0 }
 0x512   :  { %1400 = vmatpush3.bf16.msra.mxu1 %v1399_v41 }
 0x513   :  { %1401 = vmatprep.subr.bf16.mxu1 %v1680_v0 }
 0x516   :  { %1403 = vmatpush3.bf16.msra.mxu1 %v1402_v44 }
 0x517   :  { %1404 = vmatprep.subr.bf16.mxu1 %v1680_v0 }
 0x51a   :  { %1406 = vmatpush3.bf16.msra.mxu1 %v1405_v47 }
 0x51b   :  { %1407 = vmatprep.subr.bf16.mxu1 %v1680_v0 }
 0x51e   :  { %1409 = vmatpush3.bf16.msra.mxu1 %v1408_v50 }
 0x51f   :  { %1410 = vmatprep.subr.bf16.mxu1 %v1680_v0 }
 0x522   :  { %1412 = vmatpush3.bf16.msra.mxu1 %v1411_v54 }
 0x523   :  { %1431 = vmatprep.subr.bf16.mxu1 %v1680_v0 }
 0x5d8   :  { %v506_v10 = vpop.f32.mrb[2].mxu1 }
 0x5d9   :  { %v1275_v11 = vpop.f32.mrb[3].mxu1  ;;  %v594_v17 = vrot.slane %v506_v10, %v593_v14 }
 0x5e0   :  { %v587_v16 = vpop.f32.mrb[4].mxu1 }
 0x5e1   :  { %v588_v18 = vadd.f32 %v587_v16, %v517_v15  ;;  %v1286_v19 = vpop.f32.mrb[5].mxu1  ;;  %v898_v16 = vld [vmem:[#allocation12] sm:$0xff] }
 0x5e3   :  { %v595_v20 = vadd.f32 %v594_v17, %v588_v18  ;;  %v899_v17 = vld [vmem:[#allocation12 + $0x8] sm:$0xff]  ;;  %v900_v18 = vld [vmem:[#allocation12 + $0x10] sm:$0xff] }
 0x5e4   :  { %v1414_v19 = vpack.c.bf16 %v899_v17, %v898_v16 }
 0x5e5   :  { %1462 = vtanh.f32 %v595_v20  ;;  %v901_v20 = vld [vmem:[#allocation12 + $0x18] sm:$0xff] }
 0x5ef   :  { %v1463_v21 = vpop.eup %1462 }
 0x5f0   :  { %1288 = vmatpush3.xpose.msk.msra.mxu0 %vm238_vm2, %v1463_v21  ;;  %v1417_v21 = vpack.c.bf16 %v901_v20, %v900_v18 }
 0x5f1   :  { %1292 = vmatprep.subr.mxu0 %v1682_v1 }
 0x5f3   :  { %1290 = vmatmul.mubr.msk.f32.vlgmr.msra.gmra.mrb[4].mxu0 %vm238_vm2, %v597_v23  ;;  %v902_v23 = vld [vmem:[#allocation12 + $0x20] sm:$0xff] }
 0x5f4   :  { %1293 = vmatpush3.msra.mxu0 %v430_v7  ;;  %1294 = vmatprep.mubr.msk.f32.mxu0 %vm1681_vm0, %v1682_v1 }
 0x5f5   :  { %1413 = vmatprep.subr.bf16.mxu0 %v1680_v0 }
 0x6c6   :  { %v670_v24 = vpop.f32.mrb[4].mxu0 }
 0x6c7   :  { %v1291_v25 = vpop.f32.mrb[5].mxu0  ;;  %v675_v26 = vsel %vm674_vm4, %v670_v24, -inf }
 0x6c8   :  { %676 = vmax.xlane.f32.xlu0 %v675_v26  ;;  %v904_v26 = vld [vmem:[#allocation12 + $0x30] sm:$0xff] }
 0x755   :  { %v677_v27 = vpop.xlane.xlu0 %676 }
 0x756   :  { %v678_v28 = vsub.f32 %v670_v24, %v677_v27  ;;  %v903_v24 = vld [vmem:[#allocation12 + $0x28] sm:$0xff]  ;;  %v905_v27 = vld [vmem:[#allocation12 + $0x38] sm:$0xff] }
 0x757   :  { %v1420_v25 = vpack.c.bf16 %v903_v24, %v902_v23  ;;  %v1020_v23 = vrot.slane %v1915_v22, 6 }
 0x758   :  { %v679_v29 = vmul.f32 1.442695, %v678_v28 }
 0x75a   :  { %1464 = vpow2.f32 %v679_v29  ;;  %v893_v29 = vrot.slane %v1908_v12, 4 }
 0x764   :  { %v1465_v30 = vpop.eup %1464 }
 0x765   :  { %v681_v31 = vsel %vm674_vm4, %v1465_v30, 0.0 }
 0x766   :  { %682 = vadd.xlane.f32.xlu1 %v681_v31  ;;  %v906_v31 = vld [vmem:[#allocation12 + $0x40] sm:$0xff] }
 0x777   :  { %767 = vrot.lane.b32.xlu1 %v766_v35, %s1684_s1  ;;  %v908_v35 = vld [vmem:[#allocation12 + $0x50] sm:$0xff] }
 0x778   :  { %v1429_v37 = vpack.c.bf16 %v909_v36, %v908_v35 }
 0x77b   :  { %867 = vrot.lane.b32.xlu1 %v866_v55, %s1683_s0 }
 0x7f3   :  { %v683_v32 = vpop.xlane.xlu1 %682 }
 0x7f4   :  { %1466 = vrcp.f32 %v683_v32  ;;  %v907_v32 = vld [vmem:[#allocation12 + $0x48] sm:$0xff] }
 0x7f7   :  { %v768_v58 = vpop.permute.xlu1 %767 }
 0x7fe   :  { %v1467_v33 = vpop.eup %1466 }
 0x7ff   :  { %v1963_v34 = vmul.f32 %v1467_v33, %v1465_v30  ;;  %v1423_v30 = vpack.c.bf16 %v905_v27, %v904_v26  ;;  %v1426_v33 = vpack.c.bf16 %v907_v32, %v906_v31 }
 0x801   :  { %1295 = vmatmul.mubr.msk.f32.vlgmr.msra.gmra.mrb[6].mxu0 %vm686_vm5, %v1963_v34 }
 0x802   :  { %1348 = vmatprep.mubr.msk.f32.mxu0 %vm1681_vm0, %v1682_v1  ;;  %1415 = vmatpush3.bf16.msra.mxu0 %v1414_v19 }
 0x803   :  { %1416 = vmatprep.subr.bf16.mxu0 %v1680_v0 }
 0x806   :  { %1418 = vmatpush3.bf16.msra.mxu0 %v1417_v21 }
 0x807   :  { %1419 = vmatprep.subr.bf16.mxu0 %v1680_v0 }
 0x80a   :  { %1421 = vmatpush3.bf16.msra.mxu0 %v1420_v25 }
 0x80b   :  { %1422 = vmatprep.subr.bf16.mxu0 %v1680_v0 }
 0x80e   :  { %1424 = vmatpush3.bf16.msra.mxu0 %v1423_v30 }
 0x80f   :  { %1425 = vmatprep.subr.bf16.mxu0 %v1680_v0 }
 0x812   :  { %1427 = vmatpush3.bf16.msra.mxu0 %v1426_v33 }
 0x813   :  { %1428 = vmatprep.subr.bf16.mxu0 %v1680_v0 }
 0x816   :  { %1430 = vmatpush3.bf16.msra.mxu0 %v1429_v37 }
 0x8d4   :  { %v756_v56 = vpop.f32.mrb[6].mxu0 }
 0x8d5   :  { %762 = vrot.lane.b32.xlu0 %v756_v56, %s1683_s0  ;;  %v1296_v57 = vpop.f32.mrb[7].mxu0 }
 0x947   :  { %v2015_v59 = vpop.permute.xlu0 %762 }
 0x948   :  { %v2020_v60 = vsel %vm238_vm2, %v1942_v5, %v2015_v59 }
 0x949   :  { %v770_v62 = vsel %vm328_vm3, %v2020_v60, %v768_v58 }
 0x94a   :  { %1322 = vmatmul.mubr.msk.f32.vlgmr.msra.gmra.mrb[6].mxu1 %vm785_vm6, %v770_v62 }
 0x94b   :  { %1359 = vmatprep.mubr.msk.f32.mxu1 %vm1681_vm0, %v1682_v1  ;;  %v868_v1 = vpop.permute.xlu1 %867 }
 0xa1d   :  { %v855_v2 = vpop.f32.mrb[6].mxu1 }
 0xa1e   :  { %v856_v3 = vadd.f32 %v855_v2, %v783_v63  ;;  %v1323_v4 = vpop.f32.mrb[7].mxu1  ;;  %v1013_v63 = vld [vmem:[%s2101_s11] sm:$0xff]  ;;  %v1014_v2 = vld [vmem:[%s2101_s11 + $0x8] sm:$0xff] }
 0xa20   :  { %1468 = vtanh.f32 %v856_v3  ;;  %v1162_v7 = vmul.f32 -1.442695, %v856_v3  ;;  %v1015_v3 = vld [vmem:[%s2101_s11 + $0x10] sm:$0xff] }
 0xa22   :  { %1470 = vpow2.f32 %v1162_v7  ;;  %v1016_v7 = vld [vmem:[%s2101_s11 + $0x18] sm:$0xff]  ;;  %s1686_s11 = smov 96  }
 0xa2a   :  { %v1469_v6 = vpop.eup %1468 }
 0xa2b   :  { %872 = vrot.lane.b32.xlu0 %v1469_v6, %s1684_s1  ;;  %v1432_v6 = vpack.c.bf16 %v1014_v2, %v1013_v63 }
 0xa2c   :  { %v1471_v5 = vpop.eup %1470 }
 0xa2d   :  { %v862_v8 = vadd.f32 1.0, %v1471_v5  ;;  %1433 = vmatpush3.bf16.msra.mxu1 %v1432_v6  ;;  %v1435_v5 = vpack.c.bf16 %v1016_v7, %v1015_v3 }
 0xa2e   :  { %1434 = vmatprep.subr.bf16.mxu1 %v1680_v0 }
 0xa2f   :  { %1472 = vrcp.f32 %v862_v8  ;;  %v1095_v8 = vrot.slane %v1932_v52, 7 }
 0xa31   :  { %1436 = vmatpush3.bf16.msra.mxu1 %v1435_v5 }
 0xa39   :  { %v1473_v9 = vpop.eup %1472 }
 0xa3a   :  { %v870_v13 = vmul.f32 %v1473_v9, %v868_v1 }
 0xa9d   :  { %v873_v10 = vpop.permute.xlu0 %872 }
 0xa9e   :  { %v875_v11 = vmul.f32 %v1473_v9, %v873_v10 }
 0xaa0   :  { %877 = vrot.lane.b32.xlu0 %v875_v11, %s1683_s0 }
 0xb12   :  { %v878_v14 = vpop.permute.xlu0 %877 }
 0xb13   :  { %v2030_v15 = vadd.f32 %v878_v14, %v870_v13 }
 0xb15   :  { %1474 = vtanh.f32 %v2030_v15  ;;  %v1102_v1 = vrot.slane %v2030_v15, 5 }
 0xb1f   :  { %v1475_v28 = vpop.eup %1474 }
 0xb20   :  { %883 = vrot.lane.b32.xlu1 %v1475_v28, %s1684_s1 }
 0xb24   :  { %894 = vrot.lane.b32.xlu1 %v893_v29, %s1684_s1 }
 0xb28   :  { %993 = vrot.lane.b32.xlu1 %v992_v38, %s1683_s0 }
 0xb92   :  { %v884_v39 = vpop.permute.xlu1 %883 }
 0xb93   :  { %v2043_v40 = vmul.f32 %v1473_v9, %v884_v39 }
 0xb95   :  { %888 = vrot.lane.b32.xlu0 %v2043_v40, %s1683_s0 }
 0xb96   :  { %v895_v43 = vpop.permute.xlu1 %894 }
 0xb9a   :  { %v994_v58 = vpop.permute.xlu1 %993 }
 0xc07   :  { %v889_v41 = vpop.permute.xlu0 %888 }
 0xc08   :  { %v891_v42 = vsel %vm238_vm2, %v889_v41, %v2015_v59 }
 0xc09   :  { %v892_v44 = vadd.f32 %v891_v42, %v2020_v60 }
 0xc0b   :  { %v897_v45 = vsel %vm328_vm3, %v892_v44, %v895_v43 }
 0xc0c   :  { %1349 = vmatmul.mubr.msk.f32.vlgmr.msra.gmra.mrb[8].mxu0 %vm785_vm6, %v897_v45 }
 0xcdf   :  { %v981_v47 = vpop.f32.mrb[8].mxu0 }
 0xce0   :  { %v982_v48 = vadd.f32 %v981_v47, %v910_v46  ;;  %v1350_v49 = vpop.f32.mrb[9].mxu0 }
 0xce2   :  { %1476 = vtanh.f32 %v982_v48  ;;  %v1164_v51 = vmul.f32 -1.442695, %v982_v48 }
 0xce4   :  { %1478 = vpow2.f32 %v1164_v51 }
 0xcec   :  { %v1477_v50 = vpop.eup %1476 }
 0xced   :  { %998 = vrot.lane.b32.xlu0 %v1477_v50, %s1684_s1 }
 0xcee   :  { %v1479_v53 = vpop.eup %1478 }
 0xcef   :  { %v988_v54 = vadd.f32 1.0, %v1479_v53 }
 0xcf1   :  { %1480 = vrcp.f32 %v988_v54 }
 0xcfb   :  { %v1481_v55 = vpop.eup %1480 }
 0xcfc   :  { %v996_v59 = vmul.f32 %v1481_v55, %v994_v58 }
 0xd5f   :  { %v999_v56 = vpop.permute.xlu0 %998 }
 0xd60   :  { %v1001_v57 = vmul.f32 %v1481_v55, %v999_v56 }
 0xd62   :  { %1003 = vrot.lane.b32.xlu0 %v1001_v57, %s1683_s0 }
 0xdd4   :  { %v1004_v60 = vpop.permute.xlu0 %1003 }
 0xdd5   :  { %v1006_v62 = vadd.f32 %v1004_v60, %v996_v59 }
 0xdd7   :  { %1482 = vtanh.f32 %v1006_v62  ;;  %v1109_v9 = vrot.slane %v1006_v62, 3 }
 0xde1   :  { %v1483_v4 = vpop.eup %1482 }
 0xde2   :  { %1009 = vrot.lane.b32.xlu1 %v1483_v4, %s1684_s1 }
 0xde6   :  { %1096 = vrot.lane.b32.xlu1 %v1095_v8, %s1684_s1 }
 0xdea   :  { %1110 = vrot.lane.b32.xlu1 %v1109_v9, %s1684_s1 }
 0xdee   :  { %1133 = vrot.lane.b32.xlu1 %v1963_v34, %s1685_s7  ;;  %v1099_v34 = vrot.slane %v2043_v40, 6 }
 0xe54   :  { %v1010_v10 = vpop.permute.xlu1 %1009 }
 0xe55   :  { %v1012_v11 = vmul.f32 %v1481_v55, %v1010_v10 }
 0xe57   :  { %1018 = vrot.lane.b32.xlu0 %v1012_v11, %s1683_s0  ;;  %v1106_v14 = vrot.slane %v1012_v11, 4 }
 0xe58   :  { %v1097_v0 = vpop.permute.xlu1 %1096 }
 0xe59   :  { %v1117_v13 = vsel %vm1116_vm7, %v1938_v61, %v1097_v0 }
 0xe5a   :  { %v1119_v15 = vsel %vm1118_vm8, %v1117_v13, %v1099_v34 }
 0xe5b   :  { %1103 = vrot.lane.b32.xlu0 %v1102_v1, %s1684_s1 }
 0xe5c   :  { %v1111_v18 = vpop.permute.xlu1 %1110 }
 0xe5f   :  { %1113 = vrot.lane.b32.xlu0 %v1908_v12, %s1686_s11 }
 0xe60   :  { %v1134_v27 = vpop.permute.xlu1 %1133 }
 0xec9   :  { %v1019_v52 = vpop.permute.xlu0 %1018 }
 0xeca   :  { %1360 = vmatmul.mubr.msk.f32.vlgmr.msra.gmra.mrb[8].mxu1 %vm238_vm2, %v1019_v52 }
 0xecd   :  { %v1104_v16 = vpop.permute.xlu0 %1103 }
 0xece   :  { %v1121_v17 = vsel %vm1120_vm9, %v1119_v15, %v1104_v16 }
 0xecf   :  { %v1123_v19 = vsel %vm1122_vm10, %v1121_v17, %v1106_v14 }
 0xed0   :  { %v1125_v12 = vsel %vm1124_vm11, %v1123_v19, %v1111_v18 }
 0xed1   :  { %v1114_v20 = vpop.permute.xlu0 %1113 }
 0xed2   :  { %v1127_v21 = vsel %vm1126_vm12, %v1125_v12, %v1114_v20 }
 0xed3   :  { %1129 = vrot.lane.b32.xlu0 %v1127_v21, %s1683_s0 }
 0xf45   :  { %v1130_v61 = vpop.permute.xlu0 %1129 }
 0xf46   :  { %1132 = vst.msk [vmem:[%s2103_s13] sm:$0xff] %vm238_vm2, %v1130_v61 }
 0xf9d   :  { %v1090_v24 = vpop.f32.mrb[8].mxu1 }
 0xf9e   :  { %v1091_v25 = vadd.f32 %v1090_v24, %v1020_v23  ;;  %v1361_v26 = vpop.f32.mrb[9].mxu1 }
 0xfa0   :  { %v1136_v28 = vsel %vm156_vm1, %v1091_v25, %v1134_v27 }
 0xfa1   :  { %1138 = vst.msk [vmem:[%s2104_s14] sm:$0x1] %vm1137_vm13, %v1136_v28 }
 0xfa2   :  { %1147 = vsyncpa [#allocation3], 1 }
 0xfa3   :  { %1148 = vsyncpa [#allocation5], 1 }
 0xfa4   :  { %1149 = vsyncpa [#allocation8], 1 }
 0xfa5   :  { %1150 = vsyncpa [#allocation11], 1 }
 0xfa6   :  { %1151 = vsyncpa [#allocation14], 1 }

</bundles_post_ra>
